<compile_context>
chip_gen: v6e
topology: v6e:2x2x1
jax: 0.10.0
libtpu: 0.0.40
codegen_flags: <defaults>
</compile_context>

<pallas_src>
import functools

import jax
import jax.numpy as jnp
from jax import lax
from jax.experimental import pallas as pl
from jax.experimental.pallas import tpu as pltpu


def _spec_augment_kernel(params_ref, x_ref, o_ref, *,
                         mask_value, n_freq_masks, n_time_masks, t_tile, stride):
    """params_ref: SMEM 1-D int32, per-batch layout (stride = 1 + 2*Mf + 2*Mt):
         [length, f_starts(Mf), f_widths(Mf), t_starts(Mt), t_widths(Mt)].
       x_ref / o_ref: VMEM block (1, F, t_tile)."""
    b = pl.program_id(0)
    t_blk = pl.program_id(1)
    base = b * stride

    x = x_ref[0]                      # (F, t_tile)
    f_dim, t_dim = x.shape

    # --- 1-D frequency mask over the sublane (F) axis: shape (F, 1) ---
    f_ids = lax.broadcasted_iota(jnp.int32, (f_dim, 1), 0)
    f_mask = jnp.zeros((f_dim, 1), dtype=jnp.bool_)
    for m in range(n_freq_masks):
        f_start = params_ref[base + 1 + m]
        f_width = params_ref[base + 1 + n_freq_masks + m]
        f_mask = f_mask | ((f_ids >= f_start) & (f_ids < f_start + f_width))

    # --- 1-D time mask over the lane (T) axis: shape (1, t_tile) ---
    t0 = t_blk * t_tile               # global time offset of this tile
    t_ids = lax.broadcasted_iota(jnp.int32, (1, t_dim), 1) + t0
    t_mask = jnp.zeros((1, t_dim), dtype=jnp.bool_)
    toff = 1 + 2 * n_freq_masks
    for m in range(n_time_masks):
        t_start = params_ref[base + toff + m]
        t_width = params_ref[base + toff + n_time_masks + m]
        t_mask = t_mask | ((t_ids >= t_start) & (t_ids < t_start + t_width))
    # hoisted: valid-length clip applied once to the union of all time masks
    t_mask = t_mask & (t_ids < params_ref[base + 0])

    fill = jnp.asarray(mask_value, dtype=x.dtype)
    # (F,1) | (1,tT) broadcasts to (F,tT); single select, single store.
    o_ref[0] = jnp.where(f_mask | t_mask, fill, x)


def _block_target_bytes():
    """Chip-aware per-block byte target (double-buffered in+out ~= 4x this)."""
    kind = ""
    try:
        kind = jax.devices()[0].device_kind.lower()
    except Exception:
        pass
    if "v7" in kind:
        return 4 << 20    # v7x: ~3.2 TB/s HBM; 4x4 MiB << 32 MiB scoped VMEM
    if "v5" in kind:
        return 1 << 20    # v5e: 16 MiB scoped default; 1 MiB ~= 85% roofline
    return 2 << 20        # v6e and unknown: safe everywhere (4x2 MiB <= 8 MiB)


def _choose_time_tile(T, F, itemsize, target_bytes, max_tile=8192):
    """Fixed multiple-of-128 tile sized to ~target_bytes; no divisibility
    requirement on T (the grid uses cdiv + a ragged final block)."""
    cap = (target_bytes // max(1, F * itemsize)) // 128 * 128
    cap = max(128, min(max_tile, cap))
    t_up = -(-T // 128) * 128          # T rounded up to a lane multiple
    return min(cap, t_up)


def spec_augment(x, length, freq_starts, freq_widths, time_starts, time_widths,
                 mask_value=0.0):
    """SpecAugment masking (same semantics as the numba CUDA kernel).

    x: [B, F, T] float; length: [B] int; freq_*: [B, Mf] int; time_*: [B, Mt] int.
    """
    B, F, T = x.shape
    n_freq = freq_starts.shape[1]
    n_time = time_starts.shape[1]
    stride = 1 + 2 * n_freq + 2 * n_time

    t_tile = _choose_time_tile(T, F, jnp.dtype(x.dtype).itemsize,
                               _block_target_bytes())
    n_t = pl.cdiv(T, t_tile)           # ragged last tile handled by Pallas

    # Pack all scalar mask parameters into one flat 1-D int32 SMEM-prefetch
    # array (per-batch layout: [length, f_starts, f_widths, t_starts, t_widths]).
    params = jnp.concatenate(
        [length.reshape(B, 1).astype(jnp.int32),
         freq_starts.astype(jnp.int32), freq_widths.astype(jnp.int32),
         time_starts.astype(jnp.int32), time_widths.astype(jnp.int32)],
        axis=1,
    ).reshape(-1)

    kernel = functools.partial(
        _spec_augment_kernel,
        mask_value=float(mask_value),
        n_freq_masks=n_freq,
        n_time_masks=n_time,
        t_tile=t_tile,
        stride=stride,
    )

    grid_spec = pltpu.PrefetchScalarGridSpec(
        num_scalar_prefetch=1,
        grid=(B, n_t),
        in_specs=[pl.BlockSpec((1, F, t_tile), lambda b, t, params: (b, 0, t))],
        out_specs=pl.BlockSpec((1, F, t_tile), lambda b, t, params: (b, 0, t)),
    )

    return pl.pallas_call(
        kernel,
        out_shape=jax.ShapeDtypeStruct((B, F, T), x.dtype),
        grid_spec=grid_spec,
        compiler_params=pltpu.CompilerParams(
            dimension_semantics=("parallel", "parallel")),
    )(params, x)


def _sample_mask_params(key, length, freq_dim, freq_masks, time_masks,
                        freq_width, time_width):
    """Deterministic JAX stand-in for the torch.randint draws in forward()."""
    B = length.shape[0]
    k1, k2, k3, k4 = jax.random.split(key, 4)

    if freq_masks > 0:
        freq_starts = jax.random.randint(k1, (B, freq_masks), 0,
                                         freq_dim - freq_width + 1)
        freq_lengths = jax.random.randint(k2, (B, freq_masks), 0, freq_width + 1)
    else:
        freq_starts = jnp.zeros((B, 1), jnp.int32)
        freq_lengths = jnp.zeros((B, 1), jnp.int32)

    if time_masks > 0:
        if isinstance(time_width, int):
            t_w = jnp.full((B,), int(time_width), dtype=jnp.int32)
        else:
            # adaptive: (length * time_width).int().clamp(min=1)
            t_w = jnp.maximum(
                (length.astype(jnp.float32) * time_width).astype(jnp.int32), 1)
        u1 = jax.random.uniform(k3, (B, time_masks))
        u2 = jax.random.uniform(k4, (B, time_masks))
        start_range = jnp.maximum(1, length - t_w).astype(jnp.float32)[:, None]
        time_starts = (u1 * start_range).astype(jnp.int32)
        time_lengths = (u2 * (t_w[:, None] + 1).astype(jnp.float32)).astype(jnp.int32)
    else:
        time_starts = jnp.zeros((B, 1), jnp.int32)
        time_lengths = jnp.zeros((B, 1), jnp.int32)

    return freq_starts, freq_lengths, time_starts, time_lengths


def _reference(x, length, fs, fw, ts, tw, mask_value):
    """Pure-JAX reference of the numba kernel semantics (x: [B, F, T])."""
    B, F, T = x.shape
    f_ids = jnp.arange(F)[None, :, None]
    t_ids = jnp.arange(T)[None, None, :]
    f_mask = jnp.zeros((B, F, 1), dtype=bool)
    for m in range(fs.shape[1]):
        s = fs[:, m][:, None, None]
        w = fw[:, m][:, None, None]
        f_mask = f_mask | ((f_ids >= s) & (f_ids < s + w))
    t_mask = jnp.zeros((B, 1, T), dtype=bool)
    for m in range(ts.shape[1]):
        s = ts[:, m][:, None, None]
        w = tw[:, m][:, None, None]
        t_mask = t_mask | ((t_ids >= s) & (t_ids < s + w))
    t_mask = t_mask & (t_ids < length[:, None, None])
    return jnp.where(f_mask | t_mask, jnp.asarray(mask_value, x.dtype), x)


if __name__ == "__main__":
    # Module hyper-params (SpecAugmentNumba.__init__)
    freq_masks = 2
    time_masks = 2
    freq_width = 10
    time_width = 0.25          # float => adaptive temporal width
    mask_value = 0.0

    key = jax.random.PRNGKey(0)

    # (B, F, T): first case lane-aligned; second exercises the ragged last tile.
    for (B, F, T) in [(2, 80, 256), (2, 64, 200)]:
        key, kx, kp = jax.random.split(key, 3)
        x = jax.random.normal(kx, (B, F, T), dtype=jnp.float32)
        length = jnp.array([T, max(1, T - T // 4)], dtype=jnp.int32)[:B]

        fs, fw, ts, tw = _sample_mask_params(
            kp, length, F, freq_masks, time_masks, freq_width, time_width)

        out = spec_augment(x, length, fs, fw, ts, tw, mask_value=mask_value)
        out = jax.block_until_ready(out)

        ref = _reference(x, length, fs, fw, ts, tw, mask_value)
        assert out.shape == (B, F, T)
        assert jnp.array_equal(out, ref), f"mismatch at shape {(B, F, T)}"

    print("KERNEL_OK")
</pallas_src>

<mosaic_0001>
module attributes {stable_mosaic.version = 11 : i64} {
  func.func @_spec_augment_kernel(%arg0: i32, %arg1: i32, %arg2: memref<18xi32, #tpu.memory_space<smem>>, %arg3: memref<1x80x256xf32, #tpu.memory_space<vmem>>, %arg4: memref<1x80x256xf32, #tpu.memory_space<vmem>>) attributes {dimension_semantics = [#tpu.dimension_semantics<parallel>, #tpu.dimension_semantics<parallel>], iteration_bounds = array<i64: 2, 1>, scalar_prefetch = 1 : i64, scratch_operands = 0 : i64, tpu.core_type = #tpu.core_type<tc>, window_params = [{transform_indices = @transform_0, window_bounds = array<i64: 1, 80, 256>}, {transform_indices = @transform_1, window_bounds = array<i64: 1, 80, 256>}]} {
    %c9_i32 = arith.constant 9 : i32
    %0 = arith.muli %arg0, %c9_i32 : i32
    %c0 = arith.constant 0 : index
    %c0_0 = arith.constant 0 : index
    %c0_1 = arith.constant 0 : index
    %1 = vector.load %arg3[%c0, %c0_0, %c0_1] : memref<1x80x256xf32, #tpu.memory_space<vmem>>, vector<1x80x256xf32>
    %2 = vector.shape_cast %1 : vector<1x80x256xf32> to vector<80x256xf32>
    %3 = tpu.iota {dimensions = array<i32: 0>} : vector<80x1xi32>
    %false = arith.constant false
    %4 = vector.broadcast %false : i1 to vector<80x1xi1>
    %c1_i32 = arith.constant 1 : i32
    %5 = arith.addi %0, %c1_i32 : i32
    %c0_i32 = arith.constant 0 : i32
    %6 = arith.addi %5, %c0_i32 : i32
    %7 = arith.index_cast %6 : i32 to index
    %8 = memref.load %arg2[%7] : memref<18xi32, #tpu.memory_space<smem>>
    %c1_i32_2 = arith.constant 1 : i32
    %9 = arith.addi %0, %c1_i32_2 : i32
    %c2_i32 = arith.constant 2 : i32
    %10 = arith.addi %9, %c2_i32 : i32
    %c0_i32_3 = arith.constant 0 : i32
    %11 = arith.addi %10, %c0_i32_3 : i32
    %12 = arith.index_cast %11 : i32 to index
    %13 = memref.load %arg2[%12] : memref<18xi32, #tpu.memory_space<smem>>
    %14 = vector.broadcast %8 : i32 to vector<80x1xi32>
    %15 = arith.cmpi sge, %3, %14 : vector<80x1xi32>
    %16 = arith.addi %8, %13 : i32
    %17 = vector.broadcast %16 : i32 to vector<80x1xi32>
    %18 = arith.cmpi slt, %3, %17 : vector<80x1xi32>
    %19 = arith.andi %15, %18 : vector<80x1xi1>
    %20 = arith.ori %4, %19 : vector<80x1xi1>
    %c1_i32_4 = arith.constant 1 : i32
    %21 = arith.addi %0, %c1_i32_4 : i32
    %c1_i32_5 = arith.constant 1 : i32
    %22 = arith.addi %21, %c1_i32_5 : i32
    %23 = arith.index_cast %22 : i32 to index
    %24 = memref.load %arg2[%23] : memref<18xi32, #tpu.memory_space<smem>>
    %c1_i32_6 = arith.constant 1 : i32
    %25 = arith.addi %0, %c1_i32_6 : i32
    %c2_i32_7 = arith.constant 2 : i32
    %26 = arith.addi %25, %c2_i32_7 : i32
    %c1_i32_8 = arith.constant 1 : i32
    %27 = arith.addi %26, %c1_i32_8 : i32
    %28 = arith.index_cast %27 : i32 to index
    %29 = memref.load %arg2[%28] : memref<18xi32, #tpu.memory_space<smem>>
    %30 = vector.broadcast %24 : i32 to vector<80x1xi32>
    %31 = arith.cmpi sge, %3, %30 : vector<80x1xi32>
    %32 = arith.addi %24, %29 : i32
    %33 = vector.broadcast %32 : i32 to vector<80x1xi32>
    %34 = arith.cmpi slt, %3, %33 : vector<80x1xi32>
    %35 = arith.andi %31, %34 : vector<80x1xi1>
    %36 = arith.ori %20, %35 : vector<80x1xi1>
    %c256_i32 = arith.constant 256 : i32
    %37 = arith.muli %arg1, %c256_i32 : i32
    %38 = tpu.iota {dimensions = array<i32: 1>} : vector<1x256xi32>
    %39 = vector.broadcast %37 : i32 to vector<1x256xi32>
    %40 = arith.addi %38, %39 : vector<1x256xi32>
    %false_9 = arith.constant false
    %41 = vector.broadcast %false_9 : i1 to vector<1x256xi1>
    %c5_i32 = arith.constant 5 : i32
    %42 = arith.addi %0, %c5_i32 : i32
    %c0_i32_10 = arith.constant 0 : i32
    %43 = arith.addi %42, %c0_i32_10 : i32
    %44 = arith.index_cast %43 : i32 to index
    %45 = memref.load %arg2[%44] : memref<18xi32, #tpu.memory_space<smem>>
    %c5_i32_11 = arith.constant 5 : i32
    %46 = arith.addi %0, %c5_i32_11 : i32
    %c2_i32_12 = arith.constant 2 : i32
    %47 = arith.addi %46, %c2_i32_12 : i32
    %c0_i32_13 = arith.constant 0 : i32
    %48 = arith.addi %47, %c0_i32_13 : i32
    %49 = arith.index_cast %48 : i32 to index
    %50 = memref.load %arg2[%49] : memref<18xi32, #tpu.memory_space<smem>>
    %51 = vector.broadcast %45 : i32 to vector<1x256xi32>
    %52 = arith.cmpi sge, %40, %51 : vector<1x256xi32>
    %53 = arith.addi %45, %50 : i32
    %54 = vector.broadcast %53 : i32 to vector<1x256xi32>
    %55 = arith.cmpi slt, %40, %54 : vector<1x256xi32>
    %56 = arith.andi %52, %55 : vector<1x256xi1>
    %57 = arith.ori %41, %56 : vector<1x256xi1>
    %c5_i32_14 = arith.constant 5 : i32
    %58 = arith.addi %0, %c5_i32_14 : i32
    %c1_i32_15 = arith.constant 1 : i32
    %59 = arith.addi %58, %c1_i32_15 : i32
    %60 = arith.index_cast %59 : i32 to index
    %61 = memref.load %arg2[%60] : memref<18xi32, #tpu.memory_space<smem>>
    %c5_i32_16 = arith.constant 5 : i32
    %62 = arith.addi %0, %c5_i32_16 : i32
    %c2_i32_17 = arith.constant 2 : i32
    %63 = arith.addi %62, %c2_i32_17 : i32
    %c1_i32_18 = arith.constant 1 : i32
    %64 = arith.addi %63, %c1_i32_18 : i32
    %65 = arith.index_cast %64 : i32 to index
    %66 = memref.load %arg2[%65] : memref<18xi32, #tpu.memory_space<smem>>
    %67 = vector.broadcast %61 : i32 to vector<1x256xi32>
    %68 = arith.cmpi sge, %40, %67 : vector<1x256xi32>
    %69 = arith.addi %61, %66 : i32
    %70 = vector.broadcast %69 : i32 to vector<1x256xi32>
    %71 = arith.cmpi slt, %40, %70 : vector<1x256xi32>
    %72 = arith.andi %68, %71 : vector<1x256xi1>
    %73 = arith.ori %57, %72 : vector<1x256xi1>
    %c0_i32_19 = arith.constant 0 : i32
    %74 = arith.addi %0, %c0_i32_19 : i32
    %75 = arith.index_cast %74 : i32 to index
    %76 = memref.load %arg2[%75] : memref<18xi32, #tpu.memory_space<smem>>
    %77 = vector.broadcast %76 : i32 to vector<1x256xi32>
    %78 = arith.cmpi slt, %40, %77 : vector<1x256xi32>
    %79 = arith.andi %73, %78 : vector<1x256xi1>
    %80 = vector.broadcast %36 : vector<80x1xi1> to vector<80x256xi1>
    %81 = vector.broadcast %79 : vector<1x256xi1> to vector<80x256xi1>
    %82 = arith.ori %80, %81 : vector<80x256xi1>
    %cst = arith.constant 0.000000e+00 : f32
    %83 = vector.broadcast %cst : f32 to vector<80x256xf32>
    %84 = arith.select %82, %83, %2 : vector<80x256xi1>, vector<80x256xf32>
    %c0_20 = arith.constant 0 : index
    %c0_21 = arith.constant 0 : index
    %c0_22 = arith.constant 0 : index
    %85 = vector.load %arg4[%c0_20, %c0_21, %c0_22] : memref<1x80x256xf32, #tpu.memory_space<vmem>>, vector<1x80x256xf32>
    %86 = vector.shape_cast %85 : vector<1x80x256xf32> to vector<80x256xf32>
    %87 = vector.shape_cast %84 : vector<80x256xf32> to vector<1x80x256xf32>
    tpu.vector_store %arg4[%c0_20, %c0_21, %c0_22], %87 {strides = array<i32>} : memref<1x80x256xf32, #tpu.memory_space<vmem>>, vector<1x80x256xf32>,
    return
  }
  func.func @transform_0(%arg0: i32, %arg1: i32, %arg2: memref<18xi32, #tpu.memory_space<smem>>) -> (i32, i32, i32) {
    %c0_i32 = arith.constant 0 : i32
    %c0_i32_0 = arith.constant 0 : i32
    return %arg0, %c0_i32, %arg1 : i32, i32, i32
  }
  func.func @transform_1(%arg0: i32, %arg1: i32, %arg2: memref<18xi32, #tpu.memory_space<smem>>) -> (i32, i32, i32) {
    %c0_i32 = arith.constant 0 : i32
    %c0_i32_0 = arith.constant 0 : i32
    return %arg0, %c0_i32, %arg1 : i32, i32, i32
  }
}

</mosaic_0001>

<bundles_post_ra>
// kernel: tpu_custom_call.1
= control target key start
LH: loop header
LB: loop body
LE: loop exit
PB: predicated region body
PF: predicated region fallthrough
CT: control target
= control target key end

     0   :  { %s704_s9 = smov [#allocation3]   ;;  %s1077_s0 = inlined_call_operand.hbm [shape: s32[18], index: 0, kind: input, shape index: {}]   ;;  %s1078_s1 = inlined_call_operand.hbm [shape: f32[2,80,256], index: 1, kind: input, shape index: {}]   ;;  %s1079_s2 = inlined_call_operand.hbm [shape: f32[2,80,256], index: 2, kind: output, shape index: {}]  }
   0x1   :  { %8 = dma.hbm_to_smem %s1077_s0, 16, %s704_s9, [#allocation2] }
   0x2   :  { %670 = dma.done.wait [#allocation2], 16 }
   0x3   :  { %671 = vsyncadd [#allocation2], 4294967280 }
   0x4   :  { %10 = sfence }
   0x5   :  { %11 = vsyncpa [#allocation5], 0 }
   0x6   :  { %13 = vsyncpa [#allocation5 + $0x1], 0 }
   0x7   :  { %14 = vsyncpa [#allocation6], 0 }
   0x8   :  { %16 = vsyncpa [#allocation6 + $0x1], 0  ;;  %s729_s12 = smov 0   ;;  %s731_s13 = smov 0  }
   0x9   :  { %s733_s14 = smov 0   ;;  %s735_s15 = smov 0  }
   0xa   :  { %s737_s16 = smov 0   ;;  %s739_s17 = smov 0  }
   0xb LB: > { %s504_s0 = sadd.s32 4294967295, %s702_s17   ;;  %s505_s18 = sadd.s32 4294967294, %s702_s17   ;;  %s702_s17 = sphi %s739_s17, %s22_s17   ;;  %s698_s16 = sphi %s737_s16, %s1110_s16   ;;  %s694_s15 = sphi %s735_s15, %s1109_s15   ;;  %s690_s14 = sphi %s733_s14, %s1108_s14   ;;  %s686_s13 = sphi %s731_s13, %s1107_s13   ;;  %s682_s12 = sphi %s729_s12, %s1106_s12  }
   0xc   : > { %s34_s19 = sadd.s32 1, %s698_s16  ;;  %s43_s20 = sadd.s32 1, %s690_s14 }
   0xd   : > { %p36_p0 = scmp.ge.s32.totalorder %s34_s19, 2  ;;  %p50_p1 = scmp.ne.s32.totalorder %s690_s14, %s686_s13 }
   0xe   : > { %p51_p2 = scmp.eq.s32.totalorder %s702_s17, 0  ;;  %p56_p3 = scmp.ne.s32.totalorder %s686_s13, %s682_s12 }
   0xf   : > { %s1112_s19 = smov (%p36_p0, %s34_s19), 0  ;;  %p57_p5 = scmp.eq.s32.totalorder %s504_s0, 0 }
  0x10   : > { %p770_p4 = por %p51_p2, %p50_p1  ;;  %s38_s22 = ssub.s32 %s698_s16, %s1112_s19 }
  0x11   : > { %p82_p6 = scmp.eq.s32.totalorder %s504_s0, 1  ;;  %p41_p7 = scmp.eq.s32.totalorder %s38_s22, 0 }
  0x12   : > { %p776_p8 = por %p57_p5, %p56_p3  ;;  %p88_p10 = scmp.eq.s32.totalorder %s505_s18, 1 }
  0x13   : > { %p780_p9 = por %p82_p6, %p50_p1  ;;  %p529_p13 = scmp.lt.s32.totalorder %s702_s17, 2 }
  0x14   : > { %s785_s25 = scalar_select %p41_p7, %s690_s14, %s43_s20  }
  0x15   : > { %p787_p11 = por %p88_p10, %p56_p3  ;;  %s108_s27 = sand.u32 1, %s690_s14  }
  0x16   : > { %s513_s28 = smul.u32 160, %s108_s27  ;;  %p797_p0 = pnand %p529_p13, %p770_p4 }
  0x17   : > { %s514_s29 = smul.u32 2560, %s698_s16  ;;  %p509_p1 = scmp.ge.s32.totalorder %s702_s17, 1 }
  0x18   : > { %s112_s6 = scalar_lea.vmem [#allocation4], %s513_s28  ;;  %s109_s8 = scalar_lea.sflag [#allocation5], %s108_s27 }
  0x19   : > { %s120_s5 = scalar_lea.hbm %s1078_s1, %s514_s29  ;;  %s121_s7 = sshll.u32 %s112_s6, 4  ;;  %s122_s7 = int_to_ptr.vmem [resolvable:$true] %s121_s7 }
  0x1a   : > { %p594_p2 = pneg %p797_p0  ;;  %s605_s9 = scalar_lea.vmem %s122_s7, 2560 }
  0x1b   : > { %p606_p3 = scmp.ne.s32.totalorder %s122_s7, %s605_s9  ;;  %s705_s10 = smov [#allocation4]  }
  0x1c   : > { %s610_s11 = sshll.u32 %s705_s10, 4  ;;  %s611_s11 = int_to_ptr.vmem [resolvable:$false] %s610_s11 }
  0x1d   : > { %p608_p5 = pnand %p606_p3, %p594_p2  ;;  %s612_s0 = scalar_lea.vmem %s611_s11, 5120 }
  0x1e   : > { %p613_p4 = scmp.lt.s32.totalorder %s122_s7, %s611_s11  ;;  %p614_p7 = scmp.lt.s32.totalorder %s612_s0, %s605_s9 }
  0x1f   : > { %p609_p6 = pneg %p608_p5 }
  0x20   : > { %p615_p10 = por %p614_p7, %p613_p4 }
  0x22   : > { %p616_p13 = pnand %p615_p10, %p609_p6 }
  0x24   : > { %619 = shalt.err (!%p616_p13)
}
  0x25   : > { %s706_s18 = smov 256   ;;  %s707_s20 = smov 16  }
  0x26   : > { %524 = dma.hbm_to_vmem [thread:$0]  (!%p797_p0), %s120_s5, 2560, %s122_s7, %s109_s8, %s706_s18, %s706_s18, %s707_s20  }
  0x27   : > { %p129_p12 = scmp.lt.s32.totalorder %s702_s17, 3 }
  0x29   : > { %p130_p2 = pnand %p509_p1, %p129_p12 }
  0x2a   : > { %s813_s21 = sand.u32 (!%p130_p2), 1, %s686_s13  }
  0x2b   : > { %133 = sbr.rel (%p130_p2) target bundleno = 137 (0x89), region = 24  ;;  %s136_s27 = scalar_lea.sflag (!%p130_p2), [#allocation5], %s813_s21 }
  0x2c   : > { %s515_s22 = smul.u32 (!%p130_p2), 160, %s813_s21 }
  0x2e   : > { %s819_s28 = scalar_lea.vmem (!%p130_p2), [#allocation4], %s515_s22 }
  0x30   : > { %673 = dma.done.wait (%p776_p8), %s136_s27, 2560  }
  0x31   : > { %675 = vsyncadd (%p776_p8), %s136_s27, 4294964736  ;;  %s160_s29 = smul.u32 9, %s694_s15  ;;  %v181_v0 = vlaneseq  ;;  %v1089_v8 = vmov 0  ;;  %v1091_v11 = vmov 0  ;;  %v161_v18 = vld [vmem:[%s819_s28] sm:$0xff]  ;;  %v162_v21 = vld [vmem:[%s819_s28 + $0x8] sm:$0xff] }
  0x32   : > { %v163_v25 = vld [vmem:[%s819_s28 + $0x10] sm:$0xff]  ;;  %v164_v26 = vld [vmem:[%s819_s28 + $0x18] sm:$0xff]  ;;  %v165_v30 = vld [vmem:[%s819_s28 + $0x20] sm:$0xff] }
  0x33   : > { %s192_s30 = sadd.s32 1, %s160_s29  ;;  %s194_s3 = sadd.s32 3, %s160_s29  ;;  %v826_v1 = vshrl.u32 %v181_v0, 7  ;;  %v278_v2 = vand.u32 127, %v181_v0  ;;  %v166_v31 = vld [vmem:[%s819_s28 + $0x28] sm:$0xff]  ;;  %v167_v35 = vld [vmem:[%s819_s28 + $0x30] sm:$0xff] }
  0x34   : > { %s193_s4 = sld [smem:[#allocation3 + %s192_s30]]  ;;  %s229_s5 = sadd.s32 2, %s160_s29  ;;  %v168_v36 = vld [vmem:[%s819_s28 + $0x38] sm:$0xff]  ;;  %v169_v40 = vld [vmem:[%s819_s28 + $0x40] sm:$0xff]  ;;  %v170_v41 = vld [vmem:[%s819_s28 + $0x48] sm:$0xff] }
  0x35   : > { %s195_s6 = sld [smem:[#allocation3 + %s194_s3]]  ;;  %s231_s7 = sadd.s32 4, %s160_s29  ;;  %v183_v4 = vadd.s32 8, %v826_v1  ;;  %v279_v7 = vadd.s32 128, %v278_v2  ;;  %v184_v22 = vadd.s32 16, %v826_v1  ;;  %v185_v27 = vadd.s32 24, %v826_v1 }
  0x36   : > { %s230_s8 = sld [smem:[#allocation3 + %s229_s5]]  ;;  %s283_s9 = sadd.s32 5, %s160_s29  ;;  %v186_v32 = vadd.s32 32, %v826_v1  ;;  %v187_v37 = vadd.s32 40, %v826_v1  ;;  %v188_v42 = vadd.s32 48, %v826_v1  ;;  %v171_v45 = vld [vmem:[%s819_s28 + $0x50] sm:$0xff] }
  0x37   : > { %s232_s10 = sld [smem:[#allocation3 + %s231_s7]]  ;;  %s285_s11 = sadd.s32 7, %s160_s29  ;;  %v172_v46 = vld [vmem:[%s819_s28 + $0x58] sm:$0xff]  ;;  %v189_v47 = vadd.s32 56, %v826_v1  ;;  %v173_v50 = vld [vmem:[%s819_s28 + $0x60] sm:$0xff]  ;;  %v174_v51 = vld [vmem:[%s819_s28 + $0x68] sm:$0xff] }
  0x38   : > { %s284_s0 = sld [smem:[#allocation3 + %s283_s9]]  ;;  %s296_s18 = sadd.s32 6, %s160_s29  ;;  %v190_v52 = vadd.s32 64, %v826_v1  ;;  %v175_v55 = vld [vmem:[%s819_s28 + $0x70] sm:$0xff]  ;;  %v176_v56 = vld [vmem:[%s819_s28 + $0x78] sm:$0xff]  ;;  %v191_v57 = vadd.s32 72, %v826_v1 }
  0x39   : > { %s286_s23 = sld [smem:[#allocation3 + %s285_s11]]  ;;  %s298_s20 = sadd.s32 8, %s160_s29  ;;  %v177_v60 = vld [vmem:[%s819_s28 + $0x80] sm:$0xff]  ;;  %v178_v61 = vld [vmem:[%s819_s28 + $0x88] sm:$0xff]  ;;  %v179_v0 = vld [vmem:[%s819_s28 + $0x90] sm:$0xff] }
  0x3a   : > { %v828_v3 = vstv %s193_s4  ;;  %s830_s27 = sld [smem:[#allocation3 + %s296_s18]] }
  0x3b   : > { %vm197_vm0 = vcmp.ge.s32.totalorder %v826_v1, %v828_v3  ;;  %s207_s30 = sadd.s32 %s195_s6, %s193_s4  ;;  %s299_s3 = sld [smem:[#allocation3 + %s298_s20]]  ;;  %vm198_vm6 = vcmp.ge.s32.totalorder %v183_v4, %v828_v3 }
  0x3c   : > { %v835_v5 = vstv %s207_s30  ;;  %v837_v6 = vstv %s230_s8  ;;  %s839_s5 = sld [smem:[#allocation3 + %s160_s29]]  ;;  %s888_s6 = scalar_lea.vmem [#allocation7], %s515_s22 }
  0x3d   : > { %vm209_vm1 = vcmp.lt.s32.totalorder %v826_v1, %v835_v5  ;;  %vm234_vm2 = vcmp.ge.s32.totalorder %v826_v1, %v837_v6  ;;  %s244_s7 = sadd.s32 %s232_s10, %s230_s8  ;;  %vm210_vm7 = vcmp.lt.s32.totalorder %v183_v4, %v835_v5  ;;  %s516_s22 = smul.u32 2560, %s694_s15 }
  0x3e   : > { %vm845_vm3 = vmand %vm197_vm0, %vm209_vm1  ;;  %v849_v9 = vstv %s244_s7  ;;  %v287_v10 = vstv %s284_s0  ;;  %s417_s8 = sshll.u32 %s888_s6, 4  ;;  %s402_s15 = scalar_lea.sflag [#allocation6], %s813_s21  ;;  %s1025_s8 = int_to_ptr.vmem [resolvable:$true] %s417_s8 }
  0x3f   : > { %v1090_v8 = vsel %vm845_vm3, 4294967295, %v1089_v8  ;;  %vm246_vm4 = vcmp.lt.s32.totalorder %v826_v1, %v849_v9  ;;  %vm288_vm5 = vcmp.ge.s32.totalorder %v278_v2, %v287_v10  ;;  %s290_s29 = sadd.s32 %s286_s23, %s284_s0  ;;  %vm289_vm9 = vcmp.ge.s32.totalorder %v279_v7, %v287_v10  ;;  %vm866_vm15 = vmand %vm198_vm6, %vm210_vm7  ;;  %v180_v1 = vld [vmem:[%s819_s28 + $0x98] sm:$0xff]  ;;  %s1023_s11 = scalar_lea.hbm %s1079_s2, %s516_s22 }
  0x40   : > { %vm855_vm8 = vmand %vm234_vm2, %vm246_vm4  ;;  %v291_v12 = vstv %s290_s29  ;;  %v300_v13 = vstv %s830_s27  ;;  %vm1099_vm6 = vnez %v1090_v8  ;;  %s620_s28 = scalar_lea.vmem %s1025_s8, 2560  ;;  %s708_s0 = smov [#allocation7]  }
  0x41   : > { %v1092_v11 = vsel %vm855_vm8, 4294967295, %v1091_v11  ;;  %vm292_vm11 = vcmp.lt.s32.totalorder %v278_v2, %v291_v12  ;;  %vm301_vm12 = vcmp.ge.s32.totalorder %v278_v2, %v300_v13  ;;  %s303_s4 = sadd.s32 %s299_s3, %s830_s27  ;;  %vm293_vm13 = vcmp.lt.s32.totalorder %v279_v7, %v291_v12  ;;  %p621_p8 = scmp.ne.s32.totalorder %s1025_s8, %s620_s28 }
  0x42   : > { %vm294_vm14 = vmand %vm288_vm5, %vm292_vm11  ;;  %v304_v14 = vstv %s303_s4  ;;  %v312_v15 = vstv %s839_s5  ;;  %vm302_vm8 = vcmp.ge.s32.totalorder %v279_v7, %v300_v13  ;;  %vm1100_vm7 = vnez %v1092_v11  ;;  %s624_s18 = sshll.u32 %s708_s0, 4  ;;  %s625_s18 = int_to_ptr.vmem [resolvable:$false] %s624_s18 }
  0x43   : > { %vm305_vm0 = vcmp.lt.s32.totalorder %v278_v2, %v304_v14  ;;  %vm313_vm1 = vcmp.lt.s32.totalorder %v278_v2, %v312_v15  ;;  %vm870_vm2 = vmand %vm289_vm9, %vm293_vm13  ;;  %vm306_vm3 = vcmp.lt.s32.totalorder %v279_v7, %v304_v14  ;;  %vm314_vm13 = vcmp.lt.s32.totalorder %v279_v7, %v312_v15  ;;  %p622_p12 = pnand %p621_p8, %p780_p9  ;;  %s626_s23 = scalar_lea.vmem %s625_s18, 5120 }
  0x44   : > { %vm307_vm4 = vmand %vm301_vm12, %vm305_vm0  ;;  %vm247_vm0 = vcmp.lt.s32.totalorder %v183_v4, %v849_v9  ;;  %p627_p1 = scmp.lt.s32.totalorder %s1025_s8, %s625_s18  ;;  %p628_p3 = scmp.lt.s32.totalorder %s626_s23, %s620_s28 }
  0x45   : > { %vm309_vm10 = vmor %vm294_vm14, %vm307_vm4  ;;  %vm235_vm14 = vcmp.ge.s32.totalorder %v183_v4, %v837_v6  ;;  %p623_p0 = pneg %p622_p12 }
  0x46   : > { %vm875_vm5 = vmand %vm309_vm10, %vm313_vm1  ;;  %p629_p5 = por %p628_p3, %p627_p1 }
  0x47   : > { %vm1101_vm9 = vmor %vm1099_vm6, %vm1100_vm7  ;;  %vm236_vm7 = vcmp.ge.s32.totalorder %v184_v22, %v837_v6 }
  0x48   : > { %vm341_vm11 = vmor %vm1101_vm9, %vm875_vm5  ;;  %p630_p6 = pnand %p629_p5, %p623_p0 }
  0x49   : > { %v361_v20 = vsel %vm341_vm11, 0.0, %v161_v18  ;;  %vm308_vm12 = vmand %vm302_vm8, %vm306_vm3  ;;  %vm211_vm11 = vcmp.lt.s32.totalorder %v184_v22, %v835_v5 }
  0x4a   : > { %381 = vst [vmem:[%s888_s6] sm:$0xff] %v361_v20  ;;  %vm310_vm10 = vmor %vm870_vm2, %vm308_vm12 }
  0x4b   : > { %vm897_vm1 = vmand %vm310_vm10, %vm314_vm13  ;;  %vm248_vm13 = vcmp.lt.s32.totalorder %v184_v22, %v849_v9 }
  0x4c   : > { %vm1104_vm3 = vmmov %vm1101_vm9  ;;  %vm199_vm9 = vcmp.ge.s32.totalorder %v184_v22, %v828_v3 }
  0x4d   : > { %vm342_vm8 = vmor %vm1104_vm3, %vm897_vm1  ;;  %vm212_vm3 = vcmp.lt.s32.totalorder %v185_v27, %v835_v5 }
  0x4e   : > { %v362_v24 = vsel %vm342_vm8, 0.0, %v162_v21  ;;  %vm257_vm2 = vmand %vm235_vm14, %vm247_vm0  ;;  %vm200_vm0 = vcmp.ge.s32.totalorder %v185_v27, %v828_v3 }
  0x4f   : > { %382 = vst [vmem:[%s888_s6 + $0x8] sm:$0xff] %v362_v24  ;;  %vm267_vm4 = vmor %vm866_vm15, %vm257_vm2  ;;  %vm237_vm2 = vcmp.ge.s32.totalorder %v185_v27, %v837_v6 }
  0x50   : > { %vm343_vm6 = vmor %vm267_vm4, %vm875_vm5 }
  0x51   : > { %v363_v28 = vsel %vm343_vm6, 0.0, %v163_v25  ;;  %vm344_vm12 = vmor %vm267_vm4, %vm897_vm1  ;;  %vm249_vm4 = vcmp.lt.s32.totalorder %v185_v27, %v849_v9 }
  0x52   : > { %383 = vst [vmem:[%s888_s6 + $0x10] sm:$0xff] %v363_v28  ;;  %v364_v29 = vsel %vm344_vm12, 0.0, %v164_v26  ;;  %vm221_vm15 = vmand %vm199_vm9, %vm211_vm11  ;;  %vm213_vm12 = vcmp.lt.s32.totalorder %v186_v32, %v835_v5 }
  0x53   : > { %384 = vst [vmem:[%s888_s6 + $0x18] sm:$0xff] %v364_v29  ;;  %vm258_vm10 = vmand %vm236_vm7, %vm248_vm13  ;;  %vm201_vm13 = vcmp.ge.s32.totalorder %v186_v32, %v828_v3 }
  0x54   : > { %vm268_vm14 = vmor %vm221_vm15, %vm258_vm10  ;;  %vm238_vm10 = vcmp.ge.s32.totalorder %v186_v32, %v837_v6 }
  0x55   : > { %vm345_vm8 = vmor %vm268_vm14, %vm875_vm5 }
  0x56   : > { %v365_v33 = vsel %vm345_vm8, 0.0, %v165_v30  ;;  %vm346_vm9 = vmor %vm268_vm14, %vm897_vm1  ;;  %vm250_vm14 = vcmp.lt.s32.totalorder %v186_v32, %v849_v9 }
  0x57   : > { %385 = vst [vmem:[%s888_s6 + $0x20] sm:$0xff] %v365_v33  ;;  %v366_v34 = vsel %vm346_vm9, 0.0, %v166_v31  ;;  %vm222_vm11 = vmand %vm200_vm0, %vm212_vm3  ;;  %vm214_vm9 = vcmp.lt.s32.totalorder %v187_v37, %v835_v5 }
  0x58   : > { %386 = vst [vmem:[%s888_s6 + $0x28] sm:$0xff] %v366_v34  ;;  %vm259_vm6 = vmand %vm237_vm2, %vm249_vm4  ;;  %vm202_vm4 = vcmp.ge.s32.totalorder %v187_v37, %v828_v3 }
  0x59   : > { %vm269_vm7 = vmor %vm222_vm11, %vm259_vm6  ;;  %vm239_vm6 = vcmp.ge.s32.totalorder %v187_v37, %v837_v6 }
  0x5a   : > { %vm347_vm15 = vmor %vm269_vm7, %vm875_vm5 }
  0x5b   : > { %v367_v38 = vsel %vm347_vm15, 0.0, %v167_v35  ;;  %vm348_vm0 = vmor %vm269_vm7, %vm897_vm1  ;;  %vm251_vm7 = vcmp.lt.s32.totalorder %v187_v37, %v849_v9 }
  0x5c   : > { %387 = vst [vmem:[%s888_s6 + $0x30] sm:$0xff] %v367_v38  ;;  %v368_v39 = vsel %vm348_vm0, 0.0, %v168_v36  ;;  %vm223_vm3 = vmand %vm201_vm13, %vm213_vm12  ;;  %vm215_vm0 = vcmp.lt.s32.totalorder %v188_v42, %v835_v5 }
  0x5d   : > { %388 = vst [vmem:[%s888_s6 + $0x38] sm:$0xff] %v368_v39  ;;  %vm260_vm8 = vmand %vm238_vm10, %vm250_vm14  ;;  %vm203_vm14 = vcmp.ge.s32.totalorder %v188_v42, %v828_v3 }
  0x5e   : > { %vm270_vm2 = vmor %vm223_vm3, %vm260_vm8  ;;  %vm240_vm8 = vcmp.ge.s32.totalorder %v188_v42, %v837_v6 }
  0x5f   : > { %vm349_vm11 = vmor %vm270_vm2, %vm875_vm5 }
  0x60   : > { %v369_v43 = vsel %vm349_vm11, 0.0, %v169_v40  ;;  %vm350_vm13 = vmor %vm270_vm2, %vm897_vm1  ;;  %vm252_vm2 = vcmp.lt.s32.totalorder %v188_v42, %v849_v9 }
  0x61   : > { %389 = vst [vmem:[%s888_s6 + $0x40] sm:$0xff] %v369_v43  ;;  %v370_v44 = vsel %vm350_vm13, 0.0, %v170_v41  ;;  %vm224_vm12 = vmand %vm202_vm4, %vm214_vm9  ;;  %vm216_vm13 = vcmp.lt.s32.totalorder %v189_v47, %v835_v5 }
  0x62   : > { %390 = vst [vmem:[%s888_s6 + $0x48] sm:$0xff] %v370_v44  ;;  %vm261_vm15 = vmand %vm239_vm6, %vm251_vm7  ;;  %vm204_vm7 = vcmp.ge.s32.totalorder %v189_v47, %v828_v3 }
  0x63   : > { %vm271_vm10 = vmor %vm224_vm12, %vm261_vm15  ;;  %vm241_vm15 = vcmp.ge.s32.totalorder %v189_v47, %v837_v6 }
  0x64   : > { %vm351_vm3 = vmor %vm271_vm10, %vm875_vm5 }
  0x65   : > { %v371_v48 = vsel %vm351_vm3, 0.0, %v171_v45  ;;  %vm352_vm4 = vmor %vm271_vm10, %vm897_vm1  ;;  %vm253_vm10 = vcmp.lt.s32.totalorder %v189_v47, %v849_v9 }
  0x66   : > { %391 = vst [vmem:[%s888_s6 + $0x50] sm:$0xff] %v371_v48  ;;  %v372_v49 = vsel %vm352_vm4, 0.0, %v172_v46  ;;  %vm225_vm9 = vmand %vm203_vm14, %vm215_vm0  ;;  %vm217_vm4 = vcmp.lt.s32.totalorder %v190_v52, %v835_v5 }
  0x67   : > { %392 = vst [vmem:[%s888_s6 + $0x58] sm:$0xff] %v372_v49  ;;  %vm262_vm11 = vmand %vm240_vm8, %vm252_vm2  ;;  %vm205_vm2 = vcmp.ge.s32.totalorder %v190_v52, %v828_v3 }
  0x68   : > { %vm272_vm6 = vmor %vm225_vm9, %vm262_vm11  ;;  %vm242_vm11 = vcmp.ge.s32.totalorder %v190_v52, %v837_v6 }
  0x69   : > { %vm353_vm12 = vmor %vm272_vm6, %vm875_vm5 }
  0x6a   : > { %v373_v53 = vsel %vm353_vm12, 0.0, %v173_v50  ;;  %vm354_vm14 = vmor %vm272_vm6, %vm897_vm1  ;;  %vm254_vm6 = vcmp.lt.s32.totalorder %v190_v52, %v849_v9 }
  0x6b   : > { %393 = vst [vmem:[%s888_s6 + $0x60] sm:$0xff] %v373_v53  ;;  %v374_v54 = vsel %vm354_vm14, 0.0, %v174_v51  ;;  %vm226_vm0 = vmand %vm204_vm7, %vm216_vm13  ;;  %vm218_vm14 = vcmp.lt.s32.totalorder %v191_v57, %v835_v5 }
  0x6c   : > { %394 = vst [vmem:[%s888_s6 + $0x68] sm:$0xff] %v374_v54  ;;  %vm263_vm3 = vmand %vm241_vm15, %vm253_vm10  ;;  %vm206_vm10 = vcmp.ge.s32.totalorder %v191_v57, %v828_v3 }
  0x6d   : > { %vm273_vm8 = vmor %vm226_vm0, %vm263_vm3  ;;  %vm243_vm3 = vcmp.ge.s32.totalorder %v191_v57, %v837_v6 }
  0x6e   : > { %vm355_vm9 = vmor %vm273_vm8, %vm875_vm5 }
  0x6f   : > { %v375_v58 = vsel %vm355_vm9, 0.0, %v175_v55  ;;  %vm356_vm7 = vmor %vm273_vm8, %vm897_vm1  ;;  %vm255_vm8 = vcmp.lt.s32.totalorder %v191_v57, %v849_v9 }
  0x70   : > { %395 = vst [vmem:[%s888_s6 + $0x70] sm:$0xff] %v375_v58  ;;  %v376_v59 = vsel %vm356_vm7, 0.0, %v176_v56  ;;  %vm227_vm13 = vmand %vm205_vm2, %vm217_vm4 }
  0x71   : > { %396 = vst [vmem:[%s888_s6 + $0x78] sm:$0xff] %v376_v59  ;;  %vm264_vm12 = vmand %vm242_vm11, %vm254_vm6 }
  0x72   : > { %vm274_vm15 = vmor %vm227_vm13, %vm264_vm12 }
  0x73   : > { %vm357_vm0 = vmor %vm274_vm15, %vm875_vm5 }
  0x74   : > { %v377_v62 = vsel %vm357_vm0, 0.0, %v177_v60  ;;  %vm358_vm2 = vmor %vm274_vm15, %vm897_vm1 }
  0x75   : > { %397 = vst [vmem:[%s888_s6 + $0x80] sm:$0xff] %v377_v62  ;;  %v378_v63 = vsel %vm358_vm2, 0.0, %v178_v61  ;;  %vm228_vm4 = vmand %vm206_vm10, %vm218_vm14 }
  0x76   : > { %398 = vst [vmem:[%s888_s6 + $0x88] sm:$0xff] %v378_v63  ;;  %vm265_vm9 = vmand %vm243_vm3, %vm255_vm8 }
  0x77   : > { %vm275_vm11 = vmor %vm228_vm4, %vm265_vm9 }
  0x78   : > { %vm359_vm6 = vmor %vm275_vm11, %vm875_vm5 }
  0x79   : > { %v379_v2 = vsel %vm359_vm6, 0.0, %v179_v0  ;;  %vm360_vm7 = vmor %vm275_vm11, %vm897_vm1 }
  0x7a   : > { %399 = vst [vmem:[%s888_s6 + $0x90] sm:$0xff] %v379_v2  ;;  %v380_v3 = vsel %vm360_vm7, 0.0, %v180_v1 }
  0x7b   : > { %400 = vst [vmem:[%s888_s6 + $0x98] sm:$0xff] %v380_v3 }
  0x7c   : > { %633 = shalt.err (!%p630_p6)
}
  0x7d   : > { %s634_s20 = scalar_lea.hbm %s1023_s11, 2560  ;;  %s638_s3 = scalar_lea.hbm %s1079_s2, 5120 }
  0x7e   : > { %p635_p4 = scmp.ne.s32.totalorder %s1023_s11, %s634_s20  ;;  %p639_p13 = scmp.lt.s32.totalorder %s1023_s11, %s1079_s2 }
  0x7f   : > { %p640_p2 = scmp.lt.s32.totalorder %s638_s3, %s634_s20 }
  0x80   : > { %p636_p7 = pnand %p635_p4, %p780_p9 }
  0x81   : > { %p641_p8 = por %p640_p2, %p639_p13 }
  0x82   : > { %p637_p10 = pneg %p636_p7 }
  0x84   : > { %p642_p12 = pnand %p641_p8, %p637_p10 }
  0x86   : > { %645 = shalt.err (!%p642_p12)
}
  0x87   : > { %s709_s29 = smov 256   ;;  %s710_s4 = smov 16  }
  0x88   : > { %519 = dma.vmem_to_hbm [thread:$0]  (%p780_p9), %s1025_s8, 2560, %s1023_s11, %s402_s15, %s709_s29, %s709_s29, %s710_s4  }
  0x89 PF: > { %s432_s6 = sand.u32 1, %s682_s12   ;;  %p1105_p0 = scmp.ge.s32.totalorder %s702_s17, 2 }
  0x8a   : > { %s433_s22 = scalar_lea.sflag [#allocation6], %s432_s6 }
  0x8b   : > { %p526_p1 = pnand %p1105_p0, %p787_p11 }
  0x8d   : > { %p527_p3 = pneg %p526_p1 }
  0x8f   : > { %677 = dma.done.wait (%p527_p3), %s433_s22, 2560  }
  0x90   : > { %679 = vsyncadd (%p527_p3), %s433_s22, 4294964736  ;;  %s22_s17 = sadd.s32 1, %s702_s17   ;;  %s1106_s12 = smov %s686_s13 }
  0x91   : > { %p19_p5 = scmp.ge.s32.totalorder %s22_s17, 4   ;;  %s1107_s13 = smov %s690_s14 }
  0x92   : > { %s1108_s14 = smov %s785_s25  ;;  %s1109_s15 = smov %s698_s16 }
  0x93   : > { %s1110_s16 = smov %s1112_s19  ;;  %21 = sbr.rel (!%p19_p5) target bundleno = 11 (0xb), region = 69 }
  0x98   :  { %438 = vsyncpa [#allocation5], 1 }
  0x99   :  { %440 = vsyncpa [#allocation5 + $0x1], 1 }
  0x9a   :  { %441 = vsyncpa [#allocation6], 1 }
  0x9b   :  { %443 = vsyncpa [#allocation6 + $0x1], 1 }

</bundles_post_ra>
